<compile_context>
chip_gen: v6e
topology: v6e:2x2x1
jax: 0.10.0
libtpu: 0.0.40
codegen_flags: <defaults>
</compile_context>

<pallas_src>
import functools

import jax
import jax.numpy as jnp
from jax.experimental import pallas as pl
from jax.experimental.pallas import tpu as pltpu


def _round_up(x: int, m: int) -> int:
    return (x + m - 1) // m * m


def _spcen_kernel(s_ref, neg_alpha_ref, delta_ref, delta_r_ref, r_ref,
                  frame_ref, mlast_ref, out_ref, mcur_ref, *, eps):
    # params: (1, Fp) f32 ; data tiles: (ROWS, Fp)
    s = s_ref[...]
    neg_alpha = neg_alpha_ref[...]
    delta = delta_ref[...]
    delta_r = delta_r_ref[...]
    rr = r_ref[...]

    frame = frame_ref[...].astype(jnp.float32)
    m_last = mlast_ref[...].astype(jnp.float32)

    # smoothing update: m_curr = (1 - s) * m_last + s * frame
    m_curr = m_last + s * (frame - m_last)

    # PCEN compression:
    #   frame / (m_curr + eps)**alpha  ==  frame * exp(-alpha * log(m_curr + eps))
    inv_denom = jnp.exp(neg_alpha * jnp.log(m_curr + eps))
    out = jnp.power(frame * inv_denom + delta, rr) - delta_r

    out_ref[...] = out.astype(out_ref.dtype)
    mcur_ref[...] = m_curr.astype(mcur_ref.dtype)


def spcen(frame, m_last, s, alpha, delta, r, eps=1e-6):
    """frame, m_last: (B, T, F); s/alpha/delta/r: (F,). Returns (out, m_curr)."""
    B, T, F = frame.shape
    N = B * T
    Fp = _round_up(F, 128)          # lane-dense last dim
    f32 = jnp.float32
    dtype = frame.dtype

    # --- per-frequency parameters, padded so padded lanes stay finite ---
    def pad_param(p, fill):
        p = p.astype(f32).reshape(-1)
        if Fp != F:
            p = jnp.pad(p, (0, Fp - F), constant_values=fill)
        return p.reshape(1, Fp)

    s_p = pad_param(s, 0.0)
    neg_alpha_p = pad_param(-alpha, 0.0)
    delta_p = pad_param(delta, 1.0)
    r_p = pad_param(r, 1.0)
    delta_r_p = pad_param(jnp.power(delta.astype(f32), r.astype(f32)), 1.0)

    # --- flatten data to (N, F), pad to (N_pad, Fp), pick row tile ~1 MiB ---
    bytes_per_row = Fp * 4
    block_rows = max(8, ((1 << 20) // bytes_per_row) // 8 * 8)
    block_rows = min(block_rows, _round_up(N, 8))
    N_pad = _round_up(N, block_rows)

    def pad_data(x):
        x = x.reshape(N, F)
        if (N_pad, Fp) != (N, F):
            x = jnp.pad(x, ((0, N_pad - N), (0, Fp - F)))
        return x

    frame_p = pad_data(frame)
    mlast_p = pad_data(m_last)

    grid = (N_pad // block_rows,)
    param_spec = pl.BlockSpec((1, Fp), lambda i: (0, 0))
    data_spec = pl.BlockSpec((block_rows, Fp), lambda i: (i, 0))

    out_p, mcur_p = pl.pallas_call(
        functools.partial(_spcen_kernel, eps=float(eps)),
        grid=grid,
        in_specs=[param_spec, param_spec, param_spec, param_spec, param_spec,
                  data_spec, data_spec],
        out_specs=[data_spec, data_spec],
        out_shape=(jax.ShapeDtypeStruct((N_pad, Fp), dtype),
                   jax.ShapeDtypeStruct((N_pad, Fp), dtype)),
        compiler_params=pltpu.CompilerParams(
            dimension_semantics=("parallel",)),
    )(s_p, neg_alpha_p, delta_p, delta_r_p, r_p, frame_p, mlast_p)

    out = out_p[:N, :F].reshape(B, T, F)
    m_curr = mcur_p[:N, :F].reshape(B, T, F)
    return out, m_curr


def spcen_ref(frame, m_last, s, alpha, delta, r, eps=1e-6):
    """Pure-JAX reference (mirrors the PyTorch forward)."""
    m_curr = (1.0 - s)[None, None, :] * m_last + s[None, None, :] * frame
    out = (frame / jnp.power(m_curr + eps, alpha) + delta) ** r - delta ** r
    return out, m_curr


if __name__ == "__main__":
    # typical mel-band layout: F=80 is NOT a multiple of 128 -> exercises
    # the lane-padding path as well.
    B, T, F = 2, 16, 80
    key = jax.random.PRNGKey(0)
    k1, k2 = jax.random.split(key)

    # spectrogram-like (non-negative) inputs
    frame = jnp.abs(jax.random.normal(k1, (B, T, F), dtype=jnp.float32))
    m_last = jnp.abs(jax.random.normal(k2, (B, T, F), dtype=jnp.float32)) * 0.5

    # deterministic per-frequency parameters (typical PCEN values, slight ramp)
    ramp = jnp.linspace(0.0, 1.0, F, dtype=jnp.float32)
    s = 0.025 + 0.05 * ramp
    alpha = 0.98 - 0.1 * ramp
    delta = 2.0 + 0.5 * ramp
    r = 0.5 + 0.1 * ramp

    out, m_curr = spcen(frame, m_last, s, alpha, delta, r)
    jax.block_until_ready((out, m_curr))

    out_ref, m_ref = spcen_ref(frame, m_last, s, alpha, delta, r)
    # m_curr is exact arithmetic; out differs only in last ULPs from the
    # exp/log rewrite of the per-channel power.
    assert jnp.allclose(m_curr, m_ref, rtol=1e-5, atol=1e-5), "m_curr mismatch"
    assert jnp.allclose(out, out_ref, rtol=1e-4, atol=1e-5), "out mismatch"
    assert bool(jnp.all(jnp.isfinite(out))), "non-finite output"

    print("KERNEL_OK")
</pallas_src>

<mosaic_0001>
module attributes {stable_mosaic.version = 11 : i64} {
  func.func @_spcen_kernel(%arg0: i32, %arg1: memref<1x128xf32, #tpu.memory_space<vmem>>, %arg2: memref<1x128xf32, #tpu.memory_space<vmem>>, %arg3: memref<1x128xf32, #tpu.memory_space<vmem>>, %arg4: memref<1x128xf32, #tpu.memory_space<vmem>>, %arg5: memref<1x128xf32, #tpu.memory_space<vmem>>, %arg6: memref<32x128xf32, #tpu.memory_space<vmem>>, %arg7: memref<32x128xf32, #tpu.memory_space<vmem>>, %arg8: memref<32x128xf32, #tpu.memory_space<vmem>>, %arg9: memref<32x128xf32, #tpu.memory_space<vmem>>) attributes {dimension_semantics = [#tpu.dimension_semantics<parallel>], iteration_bounds = array<i64: 1>, scalar_prefetch = 0 : i64, scratch_operands = 0 : i64, tpu.core_type = #tpu.core_type<tc>, window_params = [{pipeline_mode = #tpu.pipeline_mode<synchronous>, transform_indices = @transform_0, window_bounds = array<i64: 1, 128>}, {pipeline_mode = #tpu.pipeline_mode<synchronous>, transform_indices = @transform_1, window_bounds = array<i64: 1, 128>}, {pipeline_mode = #tpu.pipeline_mode<synchronous>, transform_indices = @transform_2, window_bounds = array<i64: 1, 128>}, {pipeline_mode = #tpu.pipeline_mode<synchronous>, transform_indices = @transform_3, window_bounds = array<i64: 1, 128>}, {pipeline_mode = #tpu.pipeline_mode<synchronous>, transform_indices = @transform_4, window_bounds = array<i64: 1, 128>}, {transform_indices = @transform_5, window_bounds = array<i64: 32, 128>}, {transform_indices = @transform_6, window_bounds = array<i64: 32, 128>}, {transform_indices = @transform_7, window_bounds = array<i64: 32, 128>}, {transform_indices = @transform_8, window_bounds = array<i64: 32, 128>}]} {
    %c0 = arith.constant 0 : index
    %c0_0 = arith.constant 0 : index
    %0 = vector.load %arg1[%c0, %c0_0] : memref<1x128xf32, #tpu.memory_space<vmem>>, vector<1x128xf32>
    %c0_1 = arith.constant 0 : index
    %c0_2 = arith.constant 0 : index
    %1 = vector.load %arg2[%c0_1, %c0_2] : memref<1x128xf32, #tpu.memory_space<vmem>>, vector<1x128xf32>
    %c0_3 = arith.constant 0 : index
    %c0_4 = arith.constant 0 : index
    %2 = vector.load %arg3[%c0_3, %c0_4] : memref<1x128xf32, #tpu.memory_space<vmem>>, vector<1x128xf32>
    %c0_5 = arith.constant 0 : index
    %c0_6 = arith.constant 0 : index
    %3 = vector.load %arg4[%c0_5, %c0_6] : memref<1x128xf32, #tpu.memory_space<vmem>>, vector<1x128xf32>
    %c0_7 = arith.constant 0 : index
    %c0_8 = arith.constant 0 : index
    %4 = vector.load %arg5[%c0_7, %c0_8] : memref<1x128xf32, #tpu.memory_space<vmem>>, vector<1x128xf32>
    %c0_9 = arith.constant 0 : index
    %c0_10 = arith.constant 0 : index
    %5 = vector.load %arg6[%c0_9, %c0_10] : memref<32x128xf32, #tpu.memory_space<vmem>>, vector<32x128xf32>
    %c0_11 = arith.constant 0 : index
    %c0_12 = arith.constant 0 : index
    %6 = vector.load %arg7[%c0_11, %c0_12] : memref<32x128xf32, #tpu.memory_space<vmem>>, vector<32x128xf32>
    %7 = arith.subf %5, %6 : vector<32x128xf32>
    %8 = vector.broadcast %0 : vector<1x128xf32> to vector<32x128xf32>
    %9 = arith.mulf %8, %7 : vector<32x128xf32>
    %10 = arith.addf %6, %9 : vector<32x128xf32>
    %cst = arith.constant 9.99999997E-7 : f32
    %11 = vector.broadcast %cst : f32 to vector<32x128xf32>
    %12 = arith.addf %10, %11 : vector<32x128xf32>
    %13 = math.log %12 : vector<32x128xf32>
    %14 = vector.broadcast %1 : vector<1x128xf32> to vector<32x128xf32>
    %15 = arith.mulf %14, %13 : vector<32x128xf32>
    %16 = math.exp %15 : vector<32x128xf32>
    %17 = arith.mulf %5, %16 : vector<32x128xf32>
    %18 = vector.broadcast %2 : vector<1x128xf32> to vector<32x128xf32>
    %19 = arith.addf %17, %18 : vector<32x128xf32>
    %20 = vector.broadcast %4 : vector<1x128xf32> to vector<32x128xf32>
    %21 = math.powf %19, %20 : vector<32x128xf32>
    %22 = vector.broadcast %3 : vector<1x128xf32> to vector<32x128xf32>
    %23 = arith.subf %21, %22 : vector<32x128xf32>
    %c0_13 = arith.constant 0 : index
    %c0_14 = arith.constant 0 : index
    %24 = vector.load %arg8[%c0_13, %c0_14] : memref<32x128xf32, #tpu.memory_space<vmem>>, vector<32x128xf32>
    tpu.vector_store %arg8[%c0_13, %c0_14], %23 {strides = array<i32>} : memref<32x128xf32, #tpu.memory_space<vmem>>, vector<32x128xf32>,
    %c0_15 = arith.constant 0 : index
    %c0_16 = arith.constant 0 : index
    %25 = vector.load %arg9[%c0_15, %c0_16] : memref<32x128xf32, #tpu.memory_space<vmem>>, vector<32x128xf32>
    tpu.vector_store %arg9[%c0_15, %c0_16], %10 {strides = array<i32>} : memref<32x128xf32, #tpu.memory_space<vmem>>, vector<32x128xf32>,
    return
  }
  func.func @transform_0(%arg0: i32) -> (i32, i32) {
    %c0_i32 = arith.constant 0 : i32
    %c0_i32_0 = arith.constant 0 : i32
    %c0_i32_1 = arith.constant 0 : i32
    return %c0_i32, %c0_i32_0 : i32, i32
  }
  func.func @transform_1(%arg0: i32) -> (i32, i32) {
    %c0_i32 = arith.constant 0 : i32
    %c0_i32_0 = arith.constant 0 : i32
    %c0_i32_1 = arith.constant 0 : i32
    return %c0_i32, %c0_i32_0 : i32, i32
  }
  func.func @transform_2(%arg0: i32) -> (i32, i32) {
    %c0_i32 = arith.constant 0 : i32
    %c0_i32_0 = arith.constant 0 : i32
    %c0_i32_1 = arith.constant 0 : i32
    return %c0_i32, %c0_i32_0 : i32, i32
  }
  func.func @transform_3(%arg0: i32) -> (i32, i32) {
    %c0_i32 = arith.constant 0 : i32
    %c0_i32_0 = arith.constant 0 : i32
    %c0_i32_1 = arith.constant 0 : i32
    return %c0_i32, %c0_i32_0 : i32, i32
  }
  func.func @transform_4(%arg0: i32) -> (i32, i32) {
    %c0_i32 = arith.constant 0 : i32
    %c0_i32_0 = arith.constant 0 : i32
    %c0_i32_1 = arith.constant 0 : i32
    return %c0_i32, %c0_i32_0 : i32, i32
  }
  func.func @transform_5(%arg0: i32) -> (i32, i32) {
    %c0_i32 = arith.constant 0 : i32
    %c0_i32_0 = arith.constant 0 : i32
    return %arg0, %c0_i32 : i32, i32
  }
  func.func @transform_6(%arg0: i32) -> (i32, i32) {
    %c0_i32 = arith.constant 0 : i32
    %c0_i32_0 = arith.constant 0 : i32
    return %arg0, %c0_i32 : i32, i32
  }
  func.func @transform_7(%arg0: i32) -> (i32, i32) {
    %c0_i32 = arith.constant 0 : i32
    %c0_i32_0 = arith.constant 0 : i32
    return %arg0, %c0_i32 : i32, i32
  }
  func.func @transform_8(%arg0: i32) -> (i32, i32) {
    %c0_i32 = arith.constant 0 : i32
    %c0_i32_0 = arith.constant 0 : i32
    return %arg0, %c0_i32 : i32, i32
  }
}

</mosaic_0001>

<bundles_post_ra>
// kernel: tpu_custom_call.1
= control target key start
LH: loop header
LB: loop body
LE: loop exit
PB: predicated region body
PF: predicated region fallthrough
CT: control target
= control target key end

     0   :  { %14 = vsyncpa [#allocation3], 0  ;;  %s1058_s0 = inlined_call_operand.hbm [shape: f32[1,128], index: 0, kind: input, shape index: {}]   ;;  %s1059_s1 = inlined_call_operand.vmem [shape: f32[1,128], index: 1, kind: input, shape index: {}]   ;;  %s1060_s2 = inlined_call_operand.vmem [shape: f32[1,128], index: 2, kind: input, shape index: {}]   ;;  %s1061_s3 = inlined_call_operand.vmem [shape: f32[1,128], index: 3, kind: input, shape index: {}]   ;;  %s1062_s4 = inlined_call_operand.vmem [shape: f32[1,128], index: 4, kind: input, shape index: {}]   ;;  %s1063_s5 = inlined_call_operand.hbm [shape: f32[32,128], index: 5, kind: input, shape index: {}]   ;;  %s1064_s6 = inlined_call_operand.hbm [shape: f32[32,128], index: 6, kind: input, shape index: {}]   ;;  %s1065_s7 = inlined_call_operand.hbm [shape: f32[32,128], index: 7, kind: output, shape index: {0}]   ;;  %s1066_s8 = inlined_call_operand.hbm [shape: f32[32,128], index: 8, kind: output, shape index: {1}]  }
   0x1   :  { %15 = vsyncpa [#allocation6], 0 }
   0x2   :  { %16 = vsyncpa [#allocation4], 0 }
   0x3   :  { %17 = vsyncpa [#allocation10], 0  ;;  %s568_s27 = smov [#allocation5]  }
   0x4   :  { %s41_s28 = sshll.u32 %s568_s27, 4  ;;  %s42_s28 = int_to_ptr.vmem [resolvable:$true] %s41_s28 }
   0x5   :  { %s468_s29 = scalar_lea.vmem %s42_s28, 512  ;;  %p473_p1 = scmp.lt.s32.totalorder %s42_s28, %s42_s28 }
   0x6   :  { %p469_p0 = scmp.ne.s32.totalorder %s42_s28, %s468_s29  ;;  %p474_p2 = scmp.lt.s32.totalorder %s468_s29, %s468_s29 }
   0x8   :  { %p475_p3 = por %p474_p2, %p473_p1 }
   0xa   :  { %p476_p4 = pnand %p475_p3, %p469_p0 }
   0xc   :  { %479 = shalt.err (!%p476_p4)
}
   0xd   :  { %s569_s30 = smov 128   ;;  %s570_s9 = smov 8  }
   0xe   :  { %47 = dma.hbm_to_vmem [thread:$0]  %s1063_s5, 512, %s42_s28, [#allocation6], %s569_s30, %s569_s30, %s570_s9  }
   0xf   :  { %s571_s12 = smov [#allocation2]   ;;  %s572_s14 = smov [#allocation7]  }
  0x10   :  { %s24_s13 = sshll.u32 %s571_s12, 4  ;;  %s53_s15 = sshll.u32 %s572_s14, 4  ;;  %s25_s13 = int_to_ptr.vmem [resolvable:$true] %s24_s13  ;;  %s54_s15 = int_to_ptr.vmem [resolvable:$true] %s53_s15 }
  0x11   :  { %s488_s16 = scalar_lea.vmem %s25_s13, 16  ;;  %s492_s17 = scalar_lea.vmem %s25_s13, 32 }
  0x12   :  { %p489_p5 = scmp.ne.s32.totalorder %s25_s13, %s488_s16  ;;  %p493_p6 = scmp.lt.s32.totalorder %s25_s13, %s25_s13 }
  0x13   :  { %p494_p7 = scmp.lt.s32.totalorder %s492_s17, %s488_s16 }
  0x15   :  { %p495_p8 = por %p494_p7, %p493_p6 }
  0x17   :  { %p496_p9 = pnand %p495_p8, %p489_p5 }
  0x19   :  { %499 = shalt.err (!%p496_p9)
}
  0x1a   :  { %27 = dma.hbm_to_vmem [thread:$0]  %s1058_s0, 16, %s25_s13, [#allocation3]  }
  0x1b   :  { %s508_s20 = scalar_lea.vmem %s54_s15, 512  ;;  %p513_p11 = scmp.lt.s32.totalorder %s54_s15, %s54_s15 }
  0x1c   :  { %p509_p10 = scmp.ne.s32.totalorder %s54_s15, %s508_s20  ;;  %p514_p12 = scmp.lt.s32.totalorder %s508_s20, %s508_s20 }
  0x1e   :  { %p515_p13 = por %p514_p12, %p513_p11 }
  0x20   :  { %p516_p0 = pnand %p515_p13, %p509_p10 }
  0x22   :  { %519 = shalt.err (!%p516_p0)
}
  0x23   :  { %59 = dma.hbm_to_vmem [thread:$0]  %s1064_s6, 512, %s54_s15, [#allocation6], %s569_s30, %s569_s30, %s570_s9  }
  0x24   :  { %560 = dma.done.wait [#allocation3], 16  }
  0x25   :  { %561 = vsyncadd [#allocation3], 4294967280 }
  0x26   :  { %562 = dma.done.wait [#allocation6], 1024  }
  0x27   :  { %563 = vsyncadd [#allocation6], 4294966272  ;;  %v637_v0 = vld [vmem:[#allocation5] sm:$0xff]  ;;  %v206_v1 = vld [vmem:[#allocation2] ss:$0 sm:$0xff]  ;;  %s573_s0 = smov [#allocation9]  }
  0x28   :  { %v78_v2 = vld [vmem:[#allocation7] sm:$0xff]  ;;  %v640_v4 = vld [vmem:[#allocation5 + $0x8] sm:$0xff]  ;;  %v642_v6 = vld [vmem:[#allocation5 + $0x10] sm:$0xff]  ;;  %s189_s6 = sshll.u32 %s573_s0, 4  ;;  %s190_s6 = int_to_ptr.vmem [resolvable:$true] %s189_s6 }
  0x29   :  { %v82_v3 = vsub.f32 %v637_v0, %v78_v2  ;;  %v79_v5 = vld [vmem:[#allocation7 + $0x8] sm:$0xff]  ;;  %v80_v7 = vld [vmem:[#allocation7 + $0x10] sm:$0xff]  ;;  %v644_v8 = vld [vmem:[#allocation5 + $0x18] sm:$0xff]  ;;  %s520_s22 = scalar_lea.vmem %s190_s6, 512  ;;  %p525_p2 = scmp.lt.s32.totalorder %s190_s6, %s190_s6 }
  0x2a   :  { %v81_v9 = vld [vmem:[#allocation7 + $0x18] sm:$0xff]  ;;  %v83_v11 = vsub.f32 %v640_v4, %v79_v5  ;;  %v84_v12 = vsub.f32 %v642_v6, %v80_v7  ;;  %p521_p1 = scmp.ne.s32.totalorder %s190_s6, %s520_s22  ;;  %p526_p3 = scmp.lt.s32.totalorder %s520_s22, %s520_s22 }
  0x2b   :  { %v92_v10 = vmul.f32 %v206_v1, %v82_v3  ;;  %v85_v13 = vsub.f32 %v644_v8, %v81_v9 }
  0x2c   :  { %v93_v15 = vmul.f32 %v206_v1, %v83_v11  ;;  %v94_v16 = vmul.f32 %v206_v1, %v84_v12  ;;  %p527_p4 = por %p526_p3, %p525_p2 }
  0x2d   :  { %v96_v14 = vadd.f32 %v92_v10, %v78_v2  ;;  %v95_v17 = vmul.f32 %v206_v1, %v85_v13 }
  0x2e   :  { %v97_v19 = vadd.f32 %v93_v15, %v79_v5  ;;  %v98_v20 = vadd.f32 %v94_v16, %v80_v7  ;;  %p528_p5 = pnand %p527_p4, %p521_p1 }
  0x2f   :  { %v100_v18 = vadd.f32 1e-06, %v96_v14  ;;  %168 = vst [vmem:[#allocation9] sm:$0xff] %v96_v14  ;;  %v99_v21 = vadd.f32 %v95_v17, %v81_v9 }
  0x30   :  { %v101_v22 = vadd.f32 1e-06, %v97_v19  ;;  %169 = vst [vmem:[#allocation9 + $0x8] sm:$0xff] %v97_v19  ;;  %v102_v23 = vadd.f32 1e-06, %v98_v20  ;;  %170 = vst [vmem:[#allocation9 + $0x10] sm:$0xff] %v98_v20 }
  0x31   :  { %428 = vlog2.f32 %v100_v18  ;;  %v103_v24 = vadd.f32 1e-06, %v99_v21  ;;  %171 = vst [vmem:[#allocation9 + $0x18] sm:$0xff] %v99_v21 }
  0x32   :  { %430 = vlog2.f32 %v101_v22 }
  0x33   :  { %531 = shalt.err (!%p528_p5)
}
  0x34   :  { %195 = dma.vmem_to_hbm [thread:$0]  %s190_s6, 512, %s1066_s8, [#allocation10], %s569_s30, %s569_s30, %s570_s9   ;;  %432 = vlog2.f32 %v102_v23  ;;  %v1079_v5 = vmov 0  ;;  %v574_v10 = vmov 2139095040   ;;  %v1085_v13 = vmov 0 }
  0x35   :  { %434 = vlog2.f32 %v103_v24  ;;  %v207_v26 = vld [vmem:[%s1059_s1] ss:$0 sm:$0xff]  ;;  %v1087_v14 = vmov 0  ;;  %v1093_v19 = vmov 0  ;;  %v1096_v20 = vmov 0 }
  0x36   :  { %v208_v43 = vld [vmem:[%s1060_s2] ss:$0 sm:$0xff]  ;;  %v1099_v22 = vmov 0  ;;  %v1101_v23 = vmov 0  ;;  %v575_v24 = vmov 0  }
  0x37   :  { %v665_v46 = vld [vmem:[%s1062_s4] ss:$0 sm:$0xff] }
  0x38   :  { %v670_v49 = vand.u32 2147483647, %v665_v46  ;;  %v220_v57 = vtrunc.f32 %v665_v46  ;;  %vm1071_vm7 = vcmp.lt.f32.partialorder %v665_v46, 0 }
  0x39   :  { %v737_v11 = vsel %vm1071_vm7, 0, %v574_v10 }
  0x3a   :  { %v224_v53 = vtrunc.f32 %v670_v49  ;;  %vm1067_vm0 = vcmp.eq.f32.partialorder %v670_v49, 2139095040  ;;  %vm221_vm1 = vcmp.ne.f32.partialorder %v665_v46, %v220_v57  ;;  %vm223_vm5 = vcmp.lt.f32.partialorder %v670_v49, 1266679808 }
  0x3b   :  { %vm699_vm2 = vmor %vm221_vm1, %vm1067_vm0  ;;  %v252_v15 = vxor.u32 2147483648, %v737_v11 }
  0x3c   :  { %v225_v59 = vcvt.f32.s32 %v224_v53  ;;  %vm228_vm4 = vmneg %vm699_vm2 }
  0x3e   :  { %v429_v25 = vpop.eup %428  ;;  %v226_v62 = vand.u32 1, %v225_v59  ;;  %v210_v59 = vld [vmem:[%s1061_s3] ss:$0 sm:$0xff]  ;;  %s576_s3 = smov [#allocation8]  }
  0x3f   :  { %v105_v27 = vmul.f32 0.6931472, %v429_v25  ;;  %v431_v28 = vpop.eup %430  ;;  %s177_s29 = sshll.u32 %s576_s3, 4  ;;  %s178_s29 = int_to_ptr.vmem [resolvable:$true] %s177_s29 }
  0x40   :  { %v107_v31 = vmul.f32 0.6931472, %v431_v28  ;;  %vm227_vm3 = vcmp.eq.s32.totalorder %v226_v62, 1  ;;  %s540_s10 = scalar_lea.vmem %s178_s29, 512  ;;  %p545_p7 = scmp.lt.s32.totalorder %s178_s29, %s178_s29 }
  0x41   :  { %v433_v29 = vpop.eup %432  ;;  %v118_v30 = vmul.f32 %v207_v26, %v105_v27  ;;  %vm229_vm6 = vmand %vm227_vm3, %vm228_vm4  ;;  %p541_p6 = scmp.ne.s32.totalorder %s178_s29, %s540_s10  ;;  %p546_p8 = scmp.lt.s32.totalorder %s540_s10, %s540_s10 }
  0x42   :  { %v435_v32 = vpop.eup %434  ;;  %v109_v33 = vmul.f32 0.6931472, %v433_v29  ;;  %v119_v35 = vmul.f32 %v207_v26, %v107_v31  ;;  %vm714_vm10 = vmand %vm223_vm5, %vm229_vm6 }
  0x43   :  { %v122_v34 = vmul.f32 1.442695, %v118_v30  ;;  %v111_v36 = vmul.f32 0.6931472, %v435_v32  ;;  %v1080_v5 = vsel %vm714_vm10, 4294967295, %v1079_v5  ;;  %p547_p9 = por %p546_p8, %p545_p7 }
  0x44   :  { %v120_v37 = vmul.f32 %v207_v26, %v109_v33  ;;  %v124_v38 = vmul.f32 1.442695, %v119_v35 }
  0x45   :  { %436 = vpow2.f32 %v122_v34  ;;  %v121_v39 = vmul.f32 %v207_v26, %v111_v36  ;;  %v821_v26 = vsel %vm714_vm10, %v252_v15, %v737_v11  ;;  %p548_p10 = pnand %p547_p9, %p541_p6 }
  0x46   :  { %v126_v40 = vmul.f32 1.442695, %v120_v37  ;;  %438 = vpow2.f32 %v124_v38 }
  0x47   :  { %v128_v41 = vmul.f32 1.442695, %v121_v39 }
  0x48   :  { %440 = vpow2.f32 %v126_v40 }
  0x49   :  { %442 = vpow2.f32 %v128_v41 }
  0x52   :  { %v437_v42 = vpop.eup %436 }
  0x53   :  { %v130_v44 = vmul.f32 %v437_v42, %v637_v0  ;;  %v439_v45 = vpop.eup %438 }
  0x54   :  { %v131_v50 = vmul.f32 %v439_v45, %v640_v4 }
  0x55   :  { %v441_v47 = vpop.eup %440  ;;  %v667_v48 = vadd.f32 %v208_v43, %v130_v44 }
  0x56   :  { %v132_v51 = vmul.f32 %v441_v47, %v642_v6  ;;  %v679_v54 = vadd.f32 %v208_v43, %v131_v50  ;;  %v443_v55 = vpop.eup %442 }
  0x57   :  { %v675_v52 = vand.u32 2147483647, %v667_v48  ;;  %v133_v60 = vmul.f32 %v443_v55, %v644_v8  ;;  %vm1069_vm8 = vcmp.eq.f32.partialorder %v667_v48, 0  ;;  %vm1068_vm11 = vcmp.lt.f32.partialorder %v667_v48, 0 }
  0x58   :  { %v681_v56 = vadd.f32 %v208_v43, %v132_v51  ;;  %v685_v58 = vand.u32 2147483647, %v679_v54  ;;  %vm724_vm12 = vmand %vm1071_vm7, %vm1069_vm8  ;;  %vm234_vm13 = vcmp.lt.s32.totalorder %v667_v48, 0  ;;  %vm1070_vm15 = vcmp.eq.f32.partialorder %v679_v54, 0 }
  0x59   :  { %444 = vlog2.f32 %v675_v52  ;;  %v695_v63 = vadd.f32 %v208_v43, %v133_v60  ;;  %vm235_vm9 = vcmp.gt.f32.partialorder %v675_v52, 1065353216  ;;  %vm745_vm1 = vmand %vm1068_vm11, %vm699_vm2  ;;  %vm256_vm6 = vcmp.ne.f32.partialorder %v667_v48, %v667_v48 }
  0x5a   :  { %446 = vlog2.f32 %v685_v58  ;;  %v690_v61 = vand.u32 2147483647, %v681_v56  ;;  %vm731_vm14 = vmxor %vm1071_vm7, %vm235_vm9  ;;  %v1086_v13 = vsel %vm745_vm1, 4294967295, %v1085_v13  ;;  %vm287_vm3 = vcmp.gt.f32.partialorder %v685_v58, 1065353216 }
  0x5b   :  { %v704_v1 = vand.u32 2147483647, %v695_v63  ;;  %vm752_vm4 = vmand %vm234_vm13, %vm714_vm10  ;;  %vm1072_vm9 = vcmp.ne.f32.partialorder %v665_v46, %v665_v46  ;;  %vm233_vm13 = vcmp.eq.f32.partialorder %v667_v48, 1065353216  ;;  %vm286_vm8 = vcmp.lt.s32.totalorder %v679_v54, 0 }
  0x5c   :  { %448 = vlog2.f32 %v690_v61  ;;  %v1088_v14 = vsel %vm752_vm4, 4294967295, %v1087_v14  ;;  %vm773_vm5 = vmand %vm1071_vm7, %vm1070_vm15  ;;  %vm1095_vm15 = vcmp.lt.f32.partialorder %v679_v54, 0 }
  0x5d   :  { %450 = vlog2.f32 %v704_v1  ;;  %vm779_vm0 = vmxor %vm1071_vm7, %vm287_vm3  ;;  %vm1098_vm7 = vcmp.eq.f32.partialorder %v665_v46, 0  ;;  %vm1075_vm3 = vcmp.lt.f32.partialorder %v681_v56, 0 }
  0x5e   :  { %vm786_vm11 = vmor %vm256_vm6, %vm1072_vm9  ;;  %vm1103_vm9 = vcmp.lt.f32.partialorder %v665_v46, 0 }
  0x5f   :  { %v1094_v19 = vsel %vm786_vm11, 4294967295, %v1093_v19  ;;  %vm794_vm4 = vmand %vm1095_vm15, %vm699_vm2  ;;  %vm339_vm15 = vcmp.gt.f32.partialorder %v690_v61, 1065353216  ;;  %v816_v25 = vsel %vm1103_vm9, 2139095040, %v575_v24 }
  0x60   :  { %v1097_v20 = vsel %vm794_vm4, 4294967295, %v1096_v20  ;;  %vm802_vm1 = vmor %vm233_vm13, %vm1098_vm7  ;;  %vm248_vm13 = vcmp.eq.f32.partialorder %v667_v48, 3212836864  ;;  %vm1106_vm7 = vcmp.lt.f32.partialorder %v665_v46, 0 }
  0x61   :  { %v1100_v22 = vsel %vm802_vm1, 4294967295, %v1099_v22  ;;  %vm808_vm6 = vmand %vm286_vm8, %vm714_vm10  ;;  %vm308_vm8 = vcmp.ne.f32.partialorder %v679_v54, %v679_v54  ;;  %vm1109_vm10 = vnez %v1086_v13 }
  0x62   :  { %v1102_v23 = vsel %vm808_vm6, 4294967295, %v1101_v23  ;;  %vm1104_vm9 = vmor %vm724_vm12, %vm731_vm14  ;;  %vm1105_vm6 = vcmp.eq.f32.partialorder %v681_v56, 0  ;;  %vm1113_vm14 = vcmp.eq.f32.partialorder %v667_v48, 0  ;;  %vm1127_vm12 = vcmp.eq.f32.partialorder %v670_v49, 2139095040 }
  0x63   :  { %v247_v28 = vsel %vm1104_vm9, 2139095040, %v575_v24  ;;  %vm841_vm1 = vmand %vm1106_vm7, %vm1105_vm6  ;;  %vm1114_vm6 = vcmp.lt.f32.partialorder %v667_v48, 0 }
  0x64   :  { %vm1110_vm11 = vmmov %vm1106_vm7  ;;  %v254_v33 = vsel %vm1114_vm6, %v821_v26, %v737_v11  ;;  %v249_v36 = vsel %vm248_vm13, 1065353216, %v247_v28 }
  0x65   :  { %vm849_vm4 = vmxor %vm1110_vm11, %vm339_vm15  ;;  %vm1076_vm11 = vcmp.eq.f32.partialorder %v695_v63, 0  ;;  %vm236_vm15 = vcmp.eq.f32.partialorder %v675_v52, 2139095040 }
  0x66   :  { %v445_v2 = vpop.eup %444  ;;  %vm874_vm9 = vmand %vm1075_vm3, %vm699_vm2  ;;  %vm1122_vm3 = vnez %v1088_v14 }
  0x67   :  { %v213_v3 = vmul.f32 %v445_v2, %v665_v46  ;;  %v447_v4 = vpop.eup %446  ;;  %vm1120_vm6 = vmor %vm773_vm5, %vm779_vm0  ;;  %vm1123_vm0 = vnez %v1097_v20 }
  0x68   :  { %v265_v6 = vmul.f32 %v447_v4, %v665_v46  ;;  %v299_v39 = vsel %vm1120_vm6, 2139095040, %v575_v24  ;;  %vm1124_vm6 = vcmp.lt.f32.partialorder %v665_v46, 0 }
  0x69   :  { %452 = vpow2.f32 %v213_v3  ;;  %v449_v8 = vpop.eup %448  ;;  %vm1129_vm5 = vmmov %vm1124_vm6 }
  0x6a   :  { %454 = vpow2.f32 %v265_v6  ;;  %v317_v12 = vmul.f32 %v449_v8, %v665_v46  ;;  %v451_v17 = vpop.eup %450 }
  0x6b   :  { %v369_v21 = vmul.f32 %v451_v17, %v665_v46 }
  0x6c   :  { %456 = vpow2.f32 %v317_v12 }
  0x6d   :  { %458 = vpow2.f32 %v369_v21 }
  0x76   :  { %v453_v27 = vpop.eup %452 }
  0x77   :  { %v238_v30 = vsel %vm1109_vm10, 2143289344, %v453_v27  ;;  %vm1115_vm10 = vcmp.ne.f32.partialorder %v665_v46, %v665_v46  ;;  %v455_v38 = vpop.eup %454 }
  0x78   :  { %v240_v32 = vsel %vm1113_vm14, %v816_v25, %v238_v30  ;;  %vm864_vm7 = vmor %vm308_vm8, %vm1115_vm10  ;;  %vm391_vm14 = vcmp.gt.f32.partialorder %v704_v1, 1065353216  ;;  %vm1121_vm10 = vcmp.lt.f32.partialorder %v679_v54, 0  ;;  %v290_v42 = vsel %vm1123_vm0, 2143289344, %v455_v38 }
  0x79   :  { %v242_v35 = vxor.u32 2147483648, %v240_v32  ;;  %v306_v40 = vsel %vm1121_vm10, %v821_v26, %v737_v11  ;;  %vm905_vm10 = vmand %vm1124_vm6, %vm1076_vm11  ;;  %vm352_vm8 = vcmp.eq.f32.partialorder %v681_v56, 3212836864  ;;  %vm387_vm0 = vcmp.lt.f32.partialorder %v695_v63, 0  ;;  %v457_v50 = vpop.eup %456 }
  0x7a   :  { %vm920_vm13 = vmxor %vm1129_vm5, %vm391_vm14  ;;  %vm1133_vm6 = vcmp.eq.f32.partialorder %v665_v46, 0  ;;  %vm337_vm5 = vcmp.eq.f32.partialorder %v681_v56, 1065353216  ;;  %v342_v62 = vsel %vm874_vm9, 2143289344, %v457_v50  ;;  %vm1146_vm9 = vcmp.eq.f32.partialorder %v681_v56, 0 }
  0x7b   :  { %v243_v41 = vsel %vm1122_vm3, %v242_v35, %v240_v32  ;;  %vm1128_vm3 = vcmp.eq.f32.partialorder %v679_v54, 0  ;;  %vm1137_vm14 = vmor %vm841_vm1, %vm849_vm4  ;;  %vm1143_vm1 = vcmp.lt.f32.partialorder %v681_v56, 0  ;;  %vm1144_vm4 = vnez %v1100_v22 }
  0x7c   :  { %v250_v44 = vsel %vm1127_vm12, %v249_v36, %v243_v41  ;;  %v292_v45 = vsel %vm1128_vm3, %v816_v25, %v290_v42  ;;  %vm1132_vm12 = vcmp.eq.f32.partialorder %v679_v54, 3212836864  ;;  %vm1134_vm3 = vcmp.eq.f32.partialorder %v679_v54, 1065353216 }
  0x7d   :  { %v255_v51 = vsel %vm236_vm15, %v254_v33, %v250_v44  ;;  %v294_v53 = vxor.u32 2147483648, %v292_v45  ;;  %v301_v55 = vsel %vm1132_vm12, 1065353216, %v299_v39  ;;  %vm932_vm11 = vmor %vm1134_vm3, %vm1133_vm6  ;;  %v351_v52 = vsel %vm1137_vm14, 2139095040, %v575_v24 }
  0x7e   :  { %vm1138_vm15 = vnez %v1094_v19  ;;  %vm1139_vm12 = vnez %v1080_v5  ;;  %vm1140_vm6 = vcmp.lt.s32.totalorder %v681_v56, 0  ;;  %v358_v3 = vsel %vm1143_vm1, %v821_v26, %v737_v11 }
  0x7f   :  { %v259_v60 = vsel %vm1138_vm15, 2143289344, %v255_v51  ;;  %vm954_vm3 = vmand %vm1140_vm6, %vm1139_vm12  ;;  %vm1145_vm14 = vnez %v1102_v23  ;;  %v344_v7 = vsel %vm1146_vm9, %v816_v25, %v342_v62  ;;  %vm360_vm15 = vcmp.ne.f32.partialorder %v681_v56, %v681_v56 }
  0x80   :  { %v261_v4 = vsel %vm1144_vm4, 1065353216, %v259_v60  ;;  %v295_v6 = vsel %vm1145_vm14, %v294_v53, %v292_v45  ;;  %vm402_vm6 = vmor %vm905_vm10, %vm920_vm13  ;;  %vm1147_vm1 = vcmp.eq.f32.partialorder %v665_v46, 1065353216  ;;  %vm1148_vm4 = vcmp.eq.f32.partialorder %v670_v49, 2139095040 }
  0x81   :  { %v262_v8 = vsel %vm1147_vm1, %v667_v48, %v261_v4  ;;  %v302_v9 = vsel %vm1148_vm4, %v301_v55, %v295_v6  ;;  %v346_v10 = vxor.u32 2147483648, %v344_v7  ;;  %v353_v12 = vsel %vm352_vm8, 1065353216, %v351_v52  ;;  %vm986_vm14 = vmand %vm387_vm0, %vm699_vm2  ;;  %v459_v48 = vpop.eup %458 }
  0x82   :  { %v160_v14 = vsub.f32 %v262_v8, %v210_v59  ;;  %vm1151_vm13 = vcmp.eq.f32.partialorder %v685_v58, 2139095040  ;;  %vm340_vm10 = vcmp.eq.f32.partialorder %v690_v61, 2139095040  ;;  %vm390_vm9 = vcmp.lt.s32.totalorder %v695_v63, 0 }
  0x83   :  { %v307_v15 = vsel %vm1151_vm13, %v306_v40, %v302_v9  ;;  %v347_v0 = vsel %vm954_vm3, %v346_v10, %v344_v7  ;;  %vm1152_vm2 = vcmp.ne.f32.partialorder %v665_v46, %v665_v46  ;;  %v403_v58 = vsel %vm402_vm6, 2139095040, %v575_v24  ;;  %vm397_vm13 = vmand %vm390_vm9, %vm1139_vm12 }
  0x84   :  { %v311_v16 = vsel %vm864_vm7, 2143289344, %v307_v15  ;;  %vm1001_vm8 = vmor %vm360_vm15, %vm1152_vm2  ;;  %vm404_vm1 = vcmp.eq.f32.partialorder %v695_v63, 3212836864  ;;  %164 = vst [vmem:[#allocation8] sm:$0xff] %v160_v14  ;;  %vm1156_vm3 = vcmp.eq.f32.partialorder %v665_v46, 0  ;;  %vm389_vm15 = vcmp.eq.f32.partialorder %v695_v63, 1065353216 }
  0x85   :  { %v313_v61 = vsel %vm932_vm11, 1065353216, %v311_v16  ;;  %vm1155_vm7 = vmmov %vm1148_vm4  ;;  %v394_v19 = vsel %vm986_vm14, 2143289344, %v459_v48  ;;  %vm1157_vm6 = vcmp.eq.f32.partialorder %v665_v46, 1065353216  ;;  %vm1158_vm11 = vcmp.eq.f32.partialorder %v695_v63, 0 }
  0x86   :  { %v354_v18 = vsel %vm1155_vm7, %v353_v12, %v347_v0  ;;  %vm364_vm4 = vmor %vm337_vm5, %vm1156_vm3  ;;  %v314_v20 = vsel %vm1157_vm6, %v679_v54, %v313_v61  ;;  %v396_v22 = vsel %vm1158_vm11, %v816_v25, %v394_v19  ;;  %vm412_vm5 = vcmp.ne.f32.partialorder %v695_v63, %v695_v63 }
  0x87   :  { %v359_v21 = vsel %vm340_vm10, %v358_v3, %v354_v18  ;;  %v161_v23 = vsub.f32 %v314_v20, %v210_v59  ;;  %v398_v27 = vxor.u32 2147483648, %v396_v22  ;;  %v405_v28 = vsel %vm404_vm1, 1065353216, %v403_v58  ;;  %vm1159_vm12 = vmmov %vm1157_vm6 }
  0x88   :  { %v363_v24 = vsel %vm1001_vm8, 2143289344, %v359_v21  ;;  %vm392_vm14 = vcmp.eq.f32.partialorder %v704_v1, 2139095040  ;;  %v410_v5 = vsel %vm387_vm0, %v821_v26, %v737_v11  ;;  %vm1160_vm10 = vmmov %vm1152_vm2 }
  0x89   :  { %v365_v54 = vsel %vm364_vm4, 1065353216, %v363_v24  ;;  %165 = vst [vmem:[#allocation8 + $0x8] sm:$0xff] %v161_v23  ;;  %v399_v29 = vsel %vm397_vm13, %v398_v27, %v396_v22  ;;  %vm414_vm9 = vmor %vm412_vm5, %vm1160_vm10 }
  0x8a   :  { %v366_v25 = vsel %vm1159_vm12, %v681_v56, %v365_v54  ;;  %vm1161_vm2 = vmmov %vm1155_vm7 }
  0x8b   :  { %v162_v30 = vsub.f32 %v366_v25, %v210_v59  ;;  %v406_v31 = vsel %vm1161_vm2, %v405_v28, %v399_v29  ;;  %vm1162_vm8 = vmmov %vm1156_vm3 }
  0x8c   :  { %vm416_vm1 = vmor %vm389_vm15, %vm1162_vm8  ;;  %v411_v1 = vsel %vm392_vm14, %v410_v5, %v406_v31 }
  0x8d   :  { %166 = vst [vmem:[#allocation8 + $0x10] sm:$0xff] %v162_v30  ;;  %v415_v11 = vsel %vm414_vm9, 2143289344, %v411_v1  ;;  %vm1163_vm0 = vmmov %vm1157_vm6 }
  0x8e   :  { %v417_v56 = vsel %vm416_vm1, 1065353216, %v415_v11 }
  0x8f   :  { %v418_v26 = vsel %vm1163_vm0, %v695_v63, %v417_v56 }
  0x90   :  { %v163_v32 = vsub.f32 %v418_v26, %v210_v59 }
  0x92   :  { %167 = vst [vmem:[#allocation8 + $0x18] sm:$0xff] %v163_v32 }
  0x93   :  { %551 = shalt.err (!%p548_p10)
}
  0x94   :  { %183 = dma.vmem_to_hbm [thread:$0]  %s178_s29, 512, %s1065_s7, [#allocation4], %s569_s30, %s569_s30, %s570_s9  }
  0x95   :  { %564 = dma.done.wait [#allocation4], 512  }
  0x96   :  { %565 = vsyncadd [#allocation4], 4294966784 }
  0x97   :  { %566 = dma.done.wait [#allocation10], 512  }
  0x98   :  { %567 = vsyncadd [#allocation10], 4294966784 }
  0x99   :  { %202 = vsyncpa [#allocation3], 1 }
  0x9a   :  { %203 = vsyncpa [#allocation6], 1 }
  0x9b   :  { %204 = vsyncpa [#allocation4], 1 }
  0x9c   :  { %205 = vsyncpa [#allocation10], 1 }

</bundles_post_ra>
